<compile_context>
chip_gen: v5e
topology: v5e:2x2
jax: 0.10.0
libtpu: 0.0.40
codegen_flags: <defaults>
</compile_context>

<pallas_src>
import math

import jax
import jax.numpy as jnp
from jax.experimental import pallas as pl
from jax.experimental.pallas import tpu as pltpu


# --------------------------- Kernel A: GRU + X @ W ---------------------------
def _gru_xw_kernel(x_ref, xt_ref, h0_ref, wi_ref, wh_ref, bi_ref, bh_ref,
                   xw_ref):
    f32 = jnp.float32
    f = h0_ref.shape[0]
    xt = xt_ref[...]                       # (F, F) pooled features (GRU input)
    h0 = h0_ref[...]                       # (F, F) initial GCN weight (hidden)

    # Fused gate matmuls: one (F, 3F) RHS per operand (was 6 tiny matmuls),
    # gates sliced off the lane axis. Biases packed into (1, 3F) refs.
    gi = jnp.dot(xt, wi_ref[...], preferred_element_type=f32) + bi_ref[...]
    gh = jnp.dot(h0, wh_ref[...], preferred_element_type=f32) + bh_ref[...]
    r = jax.nn.sigmoid(gi[:, :f] + gh[:, :f])
    z = jax.nn.sigmoid(gi[:, f:2 * f] + gh[:, f:2 * f])
    n = jnp.tanh(gi[:, 2 * f:] + r * gh[:, 2 * f:])
    w_new = (1.0 - z) * n + z * h0         # evolved GCN weight (F, F), f32

    # XW row tile for this grid step (GRU recompute per tile is negligible and
    # keeps the row axis megacore-safe).
    xw_ref[...] = jnp.dot(x_ref[...], w_new,
                          preferred_element_type=f32).astype(xw_ref.dtype)


# ------------------ Kernel B: tiled A_hat @ XW + ReLU + head ------------------
def _prop_head_kernel(a_ref, xw_ref, wlin_ref, blin_ref, out_ref, acc_ref):
    k = pl.program_id(1)

    @pl.when(k == 0)
    def _():
        acc_ref[...] = jnp.zeros_like(acc_ref)

    acc_ref[...] += jnp.dot(a_ref[...], xw_ref[...],
                            preferred_element_type=jnp.float32)

    @pl.when(k == pl.num_programs(1) - 1)
    def _():
        h = jnp.maximum(acc_ref[...], 0.0)                     # ReLU, (TM, F)
        # Transposed head: (OUT, F) · (TM, F)^T -> (OUT, TM); keeps N on the
        # lane axis so the store is lane-dense instead of 1-lane masked.
        out_t = jax.lax.dot_general(
            wlin_ref[...], h, (((1,), (1,)), ((), ())),
            preferred_element_type=jnp.float32)
        out_ref[...] = (out_t + blin_ref[...]).astype(out_ref.dtype)


# ------------------------------ JAX glue --------------------------------------
def _topk_pool(x, pool_weight):
    # TODO(synk): top-k node selection (sort + gather) has no clean Pallas
    # equivalent; done in plain JAX (tiny). Tie-breaking may differ from torch.
    N, F = x.shape
    score = jnp.tanh((x @ pool_weight) / jnp.linalg.norm(pool_weight))
    k = int(math.ceil((F / N) * N))            # == F for EvolveGCNH
    top_vals, perm = jax.lax.top_k(score, k)
    return x[perm] * top_vals[:, None]         # (F, F)


def _dense_norm_adj(edge_index, edge_weight, num_nodes, dtype):
    # gcn_norm: add self loops (weight 1), symmetric D^-1/2 (A+I) D^-1/2.
    # TODO(synk): assumes the input graph has no pre-existing self loops.
    loop = jnp.arange(num_nodes, dtype=edge_index.dtype)
    src = jnp.concatenate([edge_index[0], loop])
    dst = jnp.concatenate([edge_index[1], loop])
    w = jnp.concatenate([edge_weight.astype(dtype), jnp.ones((num_nodes,), dtype)])
    a = jnp.zeros((num_nodes, num_nodes), dtype).at[dst, src].add(w)
    deg = a.sum(axis=1)
    dinv = jnp.where(deg > 0, jax.lax.rsqrt(deg), 0.0)
    return dinv[:, None] * a * dinv[None, :]


def _pick_tile(n, target):
    """Largest power-of-two tile <= target that divides n, else full extent."""
    if n <= target:
        return n
    t = target
    while t >= 128:
        if n % t == 0:
            return t
        t //= 2
    return n


def recurrent_gcn_forward(x, edge_index, edge_weight, params, *,
                          tm=None, tk=None, compute_dtype=jnp.bfloat16):
    N, F = x.shape
    OUT = params["lin_w"].shape[0]
    f32 = jnp.float32

    # --- tiny host/JAX-side prep: pooling + dense normalized adjacency -------
    x_tilde = _topk_pool(x, params["pool_weight"]).astype(f32)        # (F, F)
    a_hat = _dense_norm_adj(edge_index, edge_weight, N, f32)          # (N, N)
    a_hat = a_hat.astype(compute_dtype)      # dominant HBM traffic -> bf16

    # --- fused GRU weights / packed biases (2 + 2 refs instead of 12) --------
    wi_all = params["gru_wih"].T.astype(f32)                # (F, 3F) [Wr|Wz|Wn]
    wh_all = params["gru_whh"].T.astype(f32)                # (F, 3F)
    bi_all = params["gru_bih"].reshape(1, 3 * F).astype(f32)
    bh_all = params["gru_bhh"].reshape(1, 3 * F).astype(f32)

    # --- Kernel A: evolve W, compute XW = X @ W_new (row-tiled over N) -------
    tma = _pick_tile(N, 512)
    assert N % tma == 0
    xw = pl.pallas_call(
        _gru_xw_kernel,
        out_shape=jax.ShapeDtypeStruct((N, F), compute_dtype),
        grid_spec=pltpu.PrefetchScalarGridSpec(
            num_scalar_prefetch=0,
            grid=(N // tma,),
            in_specs=[pl.BlockSpec((tma, F), lambda i: (i, 0)),
                      pl.BlockSpec((F, F), lambda i: (0, 0)),
                      pl.BlockSpec((F, F), lambda i: (0, 0)),
                      pl.BlockSpec((F, 3 * F), lambda i: (0, 0)),
                      pl.BlockSpec((F, 3 * F), lambda i: (0, 0)),
                      pl.BlockSpec((1, 3 * F), lambda i: (0, 0)),
                      pl.BlockSpec((1, 3 * F), lambda i: (0, 0))],
            out_specs=pl.BlockSpec((tma, F), lambda i: (i, 0))),
        compiler_params=pltpu.CompilerParams(
            dimension_semantics=("parallel",)),
    )(x.astype(f32), x_tilde, params["init_weight"].astype(f32),
      wi_all, wh_all, bi_all, bh_all)

    # --- Kernel B: streamed A_hat @ XW, fused ReLU + linear head -------------
    tm = _pick_tile(N, 256) if tm is None else tm
    tk = _pick_tile(N, 512) if tk is None else tk
    assert N % tm == 0 and N % tk == 0
    wlin = params["lin_w"].astype(f32)                      # (OUT, F)
    blin = params["lin_b"].reshape(OUT, 1).astype(f32)      # (OUT, 1)

    out_t = pl.pallas_call(
        _prop_head_kernel,
        out_shape=jax.ShapeDtypeStruct((OUT, N), x.dtype),  # lane-dense output
        grid_spec=pltpu.PrefetchScalarGridSpec(
            num_scalar_prefetch=0,
            grid=(N // tm, N // tk),
            in_specs=[pl.BlockSpec((tm, tk), lambda i, k: (i, k)),   # A_hat tile
                      pl.BlockSpec((tk, F), lambda i, k: (k, 0)),    # XW tile
                      pl.BlockSpec((OUT, F), lambda i, k: (0, 0)),   # head W
                      pl.BlockSpec((OUT, 1), lambda i, k: (0, 0))],  # head b
            out_specs=pl.BlockSpec((OUT, tm), lambda i, k: (0, i)),
            scratch_shapes=[pltpu.VMEM((tm, F), jnp.float32)]),
        compiler_params=pltpu.CompilerParams(
            dimension_semantics=("parallel", "arbitrary"),   # rows split on v7x
            vmem_limit_bytes=48 * 1024 * 1024),
    )(a_hat, xw, wlin, blin)

    return out_t.T                                           # (N, OUT)


# --------------------------- pure-JAX reference -------------------------------
def reference_forward(x, edge_index, edge_weight, params):
    N, F = x.shape
    xt = _topk_pool(x, params["pool_weight"])
    h0 = params["init_weight"]
    gi = xt @ params["gru_wih"].T + params["gru_bih"]
    gh = h0 @ params["gru_whh"].T + params["gru_bhh"]
    r = jax.nn.sigmoid(gi[:, :F] + gh[:, :F])
    z = jax.nn.sigmoid(gi[:, F:2 * F] + gh[:, F:2 * F])
    n = jnp.tanh(gi[:, 2 * F:] + r * gh[:, 2 * F:])
    w_new = (1.0 - z) * n + z * h0
    a_hat = _dense_norm_adj(edge_index, edge_weight, N, x.dtype)
    h = jnp.maximum(a_hat @ (x @ w_new), 0.0)
    return h @ params["lin_w"].T + params["lin_b"]


# --------------------------- deterministic params -----------------------------
def init_params(key, node_count, node_features, out_channels=1):
    F = node_features
    stdv = 1.0 / math.sqrt(F)
    ks = jax.random.split(key, 8)
    u = lambda k, shape: jax.random.uniform(k, shape, jnp.float32, -stdv, stdv)
    return dict(
        pool_weight=u(ks[0], (F,)),            # TopKPooling projection
        init_weight=u(ks[1], (F, F)),          # EvolveGCNH initial_weight
        gru_wih=u(ks[2], (3 * F, F)),
        gru_whh=u(ks[3], (3 * F, F)),
        gru_bih=u(ks[4], (3 * F,)),
        gru_bhh=u(ks[5], (3 * F,)),
        lin_w=u(ks[6], (out_channels, F)),     # torch.nn.Linear(F, out_channels)
        lin_b=u(ks[7], (out_channels,)),
    )


if __name__ == "__main__":
    N, F, OUT = 256, 16, 1                     # node_count, node_features, out
    key = jax.random.PRNGKey(0)
    kx, kw, kp = jax.random.split(key, 3)

    x = jax.random.normal(kx, (N, F), jnp.float32)
    idx = jnp.arange(N, dtype=jnp.int32)
    edge_index = jnp.stack([jnp.concatenate([idx, (idx + 1) % N]),
                            jnp.concatenate([(idx + 1) % N, idx])])  # ring
    edge_weight = jax.random.uniform(kw, (2 * N,), jnp.float32, 0.5, 1.5)
    params = init_params(kp, N, F, OUT)

    ref = reference_forward(x, edge_index, edge_weight, params)

    # f32 matmul path (tight check of kernel structure / tiling, grid = 2x2).
    out_f32 = recurrent_gcn_forward(x, edge_index, edge_weight, params,
                                    tm=128, tk=128, compute_dtype=jnp.float32)
    out_f32 = jax.block_until_ready(out_f32)
    assert out_f32.shape == (N, OUT)
    assert jnp.allclose(out_f32, ref, rtol=1e-3, atol=1e-3)

    # Default bf16 A_hat / XW path with f32 accumulation (mem-bound fast path).
    out_bf16 = recurrent_gcn_forward(x, edge_index, edge_weight, params,
                                     tm=128, tk=128)
    out_bf16 = jax.block_until_ready(out_bf16)
    assert out_bf16.shape == (N, OUT)
    assert jnp.allclose(out_bf16, ref, rtol=2e-2, atol=2e-2)

    print("KERNEL_OK")
</pallas_src>

<mosaic_0001>
module attributes {stable_mosaic.version = 11 : i64} {
  func.func @_gru_xw_kernel(%arg0: i32, %arg1: memref<256x16xf32, #tpu.memory_space<vmem>>, %arg2: memref<16x16xf32, #tpu.memory_space<vmem>>, %arg3: memref<16x16xf32, #tpu.memory_space<vmem>>, %arg4: memref<16x48xf32, #tpu.memory_space<vmem>>, %arg5: memref<16x48xf32, #tpu.memory_space<vmem>>, %arg6: memref<1x48xf32, #tpu.memory_space<vmem>>, %arg7: memref<1x48xf32, #tpu.memory_space<vmem>>, %arg8: memref<256x16xf32, #tpu.memory_space<vmem>>) attributes {dimension_semantics = [#tpu.dimension_semantics<parallel>], iteration_bounds = array<i64: 1>, scalar_prefetch = 0 : i64, scratch_operands = 0 : i64, tpu.core_type = #tpu.core_type<tc>, window_params = [{transform_indices = @transform_0, window_bounds = array<i64: 256, 16>}, {pipeline_mode = #tpu.pipeline_mode<synchronous>, transform_indices = @transform_1, window_bounds = array<i64: 16, 16>}, {pipeline_mode = #tpu.pipeline_mode<synchronous>, transform_indices = @transform_2, window_bounds = array<i64: 16, 16>}, {pipeline_mode = #tpu.pipeline_mode<synchronous>, transform_indices = @transform_3, window_bounds = array<i64: 16, 48>}, {pipeline_mode = #tpu.pipeline_mode<synchronous>, transform_indices = @transform_4, window_bounds = array<i64: 16, 48>}, {pipeline_mode = #tpu.pipeline_mode<synchronous>, transform_indices = @transform_5, window_bounds = array<i64: 1, 48>}, {pipeline_mode = #tpu.pipeline_mode<synchronous>, transform_indices = @transform_6, window_bounds = array<i64: 1, 48>}, {transform_indices = @transform_7, window_bounds = array<i64: 256, 16>}]} {
    %c0 = arith.constant 0 : index
    %c0_0 = arith.constant 0 : index
    %0 = vector.load %arg2[%c0, %c0_0] : memref<16x16xf32, #tpu.memory_space<vmem>>, vector<16x16xf32>
    %c0_1 = arith.constant 0 : index
    %c0_2 = arith.constant 0 : index
    %1 = vector.load %arg3[%c0_1, %c0_2] : memref<16x16xf32, #tpu.memory_space<vmem>>, vector<16x16xf32>
    %c0_3 = arith.constant 0 : index
    %c0_4 = arith.constant 0 : index
    %2 = vector.load %arg4[%c0_3, %c0_4] : memref<16x48xf32, #tpu.memory_space<vmem>>, vector<16x48xf32>
    %cst = arith.constant dense<0.000000e+00> : vector<16x48xf32>
    %3 = tpu.matmul %0, %2, %cst {dimension_numbers = #tpu.dot_dimension_numbers<[1], [0], [0], [1], [0, 0, 1, 1], [], []>} : vector<16x16xf32>, vector<16x48xf32>, vector<16x48xf32> -> vector<16x48xf32>
    %c0_5 = arith.constant 0 : index
    %c0_6 = arith.constant 0 : index
    %4 = vector.load %arg6[%c0_5, %c0_6] : memref<1x48xf32, #tpu.memory_space<vmem>>, vector<1x48xf32>
    %5 = vector.broadcast %4 : vector<1x48xf32> to vector<16x48xf32>
    %6 = arith.addf %3, %5 : vector<16x48xf32>
    %c0_7 = arith.constant 0 : index
    %c0_8 = arith.constant 0 : index
    %7 = vector.load %arg5[%c0_7, %c0_8] : memref<16x48xf32, #tpu.memory_space<vmem>>, vector<16x48xf32>
    %cst_9 = arith.constant dense<0.000000e+00> : vector<16x48xf32>
    %8 = tpu.matmul %1, %7, %cst_9 {dimension_numbers = #tpu.dot_dimension_numbers<[1], [0], [0], [1], [0, 0, 1, 1], [], []>} : vector<16x16xf32>, vector<16x48xf32>, vector<16x48xf32> -> vector<16x48xf32>
    %c0_10 = arith.constant 0 : index
    %c0_11 = arith.constant 0 : index
    %9 = vector.load %arg7[%c0_10, %c0_11] : memref<1x48xf32, #tpu.memory_space<vmem>>, vector<1x48xf32>
    %10 = vector.broadcast %9 : vector<1x48xf32> to vector<16x48xf32>
    %11 = arith.addf %8, %10 : vector<16x48xf32>
    %12 = vector.extract_strided_slice %6 {offsets = [0, 0], sizes = [16, 16], strides = [1, 1]} : vector<16x48xf32> to vector<16x16xf32>
    %13 = vector.extract_strided_slice %11 {offsets = [0, 0], sizes = [16, 16], strides = [1, 1]} : vector<16x48xf32> to vector<16x16xf32>
    %14 = arith.addf %12, %13 : vector<16x16xf32>
    %15 = arith.negf %14 : vector<16x16xf32>
    %16 = math.exp %15 : vector<16x16xf32>
    %cst_12 = arith.constant 1.000000e+00 : f32
    %17 = vector.broadcast %cst_12 : f32 to vector<16x16xf32>
    %18 = arith.addf %17, %16 : vector<16x16xf32>
    %19 = arith.divf %17, %18 : vector<16x16xf32>
    %20 = vector.extract_strided_slice %6 {offsets = [0, 16], sizes = [16, 16], strides = [1, 1]} : vector<16x48xf32> to vector<16x16xf32>
    %21 = vector.extract_strided_slice %11 {offsets = [0, 16], sizes = [16, 16], strides = [1, 1]} : vector<16x48xf32> to vector<16x16xf32>
    %22 = arith.addf %20, %21 : vector<16x16xf32>
    %23 = arith.negf %22 : vector<16x16xf32>
    %24 = math.exp %23 : vector<16x16xf32>
    %cst_13 = arith.constant 1.000000e+00 : f32
    %25 = vector.broadcast %cst_13 : f32 to vector<16x16xf32>
    %26 = arith.addf %25, %24 : vector<16x16xf32>
    %27 = arith.divf %25, %26 : vector<16x16xf32>
    %28 = vector.extract_strided_slice %6 {offsets = [0, 32], sizes = [16, 16], strides = [1, 1]} : vector<16x48xf32> to vector<16x16xf32>
    %29 = vector.extract_strided_slice %11 {offsets = [0, 32], sizes = [16, 16], strides = [1, 1]} : vector<16x48xf32> to vector<16x16xf32>
    %30 = arith.mulf %19, %29 : vector<16x16xf32>
    %31 = arith.addf %28, %30 : vector<16x16xf32>
    %32 = math.tanh %31 : vector<16x16xf32>
    %cst_14 = arith.constant 1.000000e+00 : f32
    %33 = vector.broadcast %cst_14 : f32 to vector<16x16xf32>
    %34 = arith.subf %33, %27 : vector<16x16xf32>
    %35 = arith.mulf %34, %32 : vector<16x16xf32>
    %36 = arith.mulf %27, %1 : vector<16x16xf32>
    %37 = arith.addf %35, %36 : vector<16x16xf32>
    %c0_15 = arith.constant 0 : index
    %c0_16 = arith.constant 0 : index
    %38 = vector.load %arg1[%c0_15, %c0_16] : memref<256x16xf32, #tpu.memory_space<vmem>>, vector<256x16xf32>
    %cst_17 = arith.constant dense<0.000000e+00> : vector<256x16xf32>
    %39 = tpu.matmul %38, %37, %cst_17 {dimension_numbers = #tpu.dot_dimension_numbers<[1], [0], [0], [1], [0, 0, 1, 1], [], []>} : vector<256x16xf32>, vector<16x16xf32>, vector<256x16xf32> -> vector<256x16xf32>
    %c0_18 = arith.constant 0 : index
    %c0_19 = arith.constant 0 : index
    %40 = vector.load %arg8[%c0_18, %c0_19] : memref<256x16xf32, #tpu.memory_space<vmem>>, vector<256x16xf32>
    tpu.vector_store %arg8[%c0_18, %c0_19], %39 {strides = array<i32>} : memref<256x16xf32, #tpu.memory_space<vmem>>, vector<256x16xf32>,
    return
  }
  func.func @transform_0(%arg0: i32) -> (i32, i32) {
    %c0_i32 = arith.constant 0 : i32
    %c0_i32_0 = arith.constant 0 : i32
    return %arg0, %c0_i32 : i32, i32
  }
  func.func @transform_1(%arg0: i32) -> (i32, i32) {
    %c0_i32 = arith.constant 0 : i32
    %c0_i32_0 = arith.constant 0 : i32
    %c0_i32_1 = arith.constant 0 : i32
    return %c0_i32, %c0_i32_0 : i32, i32
  }
  func.func @transform_2(%arg0: i32) -> (i32, i32) {
    %c0_i32 = arith.constant 0 : i32
    %c0_i32_0 = arith.constant 0 : i32
    %c0_i32_1 = arith.constant 0 : i32
    return %c0_i32, %c0_i32_0 : i32, i32
  }
  func.func @transform_3(%arg0: i32) -> (i32, i32) {
    %c0_i32 = arith.constant 0 : i32
    %c0_i32_0 = arith.constant 0 : i32
    %c0_i32_1 = arith.constant 0 : i32
    return %c0_i32, %c0_i32_0 : i32, i32
  }
  func.func @transform_4(%arg0: i32) -> (i32, i32) {
    %c0_i32 = arith.constant 0 : i32
    %c0_i32_0 = arith.constant 0 : i32
    %c0_i32_1 = arith.constant 0 : i32
    return %c0_i32, %c0_i32_0 : i32, i32
  }
  func.func @transform_5(%arg0: i32) -> (i32, i32) {
    %c0_i32 = arith.constant 0 : i32
    %c0_i32_0 = arith.constant 0 : i32
    %c0_i32_1 = arith.constant 0 : i32
    return %c0_i32, %c0_i32_0 : i32, i32
  }
  func.func @transform_6(%arg0: i32) -> (i32, i32) {
    %c0_i32 = arith.constant 0 : i32
    %c0_i32_0 = arith.constant 0 : i32
    %c0_i32_1 = arith.constant 0 : i32
    return %c0_i32, %c0_i32_0 : i32, i32
  }
  func.func @transform_7(%arg0: i32) -> (i32, i32) {
    %c0_i32 = arith.constant 0 : i32
    %c0_i32_0 = arith.constant 0 : i32
    return %arg0, %c0_i32 : i32, i32
  }
}

</mosaic_0001>

<bundles_post_ra>
// kernel: tpu_custom_call.1
= control target key start
LH: loop header
LB: loop body
LE: loop exit
PB: predicated region body
PF: predicated region fallthrough
CT: control target
= control target key end

     0   :  { %vm36_vm0 = vcmask 130048   ;;  %s537_s17 = smov 96   ;;  %s540_s18 = smov 112   ;;  %s879_s3 = inlined_call_operand.vmem [shape: f32[16,48], index: 3, kind: input, shape index: {}]   ;;  %s880_s4 = inlined_call_operand.vmem [shape: f32[16,48], index: 4, kind: input, shape index: {}]   ;;  %s881_s1 = inlined_call_operand.vmem [shape: f32[16,16], index: 1, kind: input, shape index: {}]   ;;  %s882_s2 = inlined_call_operand.vmem [shape: f32[16,16], index: 2, kind: input, shape index: {}]   ;;  %s883_s5 = inlined_call_operand.vmem [shape: f32[1,48], index: 5, kind: input, shape index: {}]   ;;  %s884_s6 = inlined_call_operand.vmem [shape: f32[1,48], index: 6, kind: input, shape index: {}]   ;;  %s885_s0 = inlined_call_operand.vmem [shape: f32[256,16], index: 0, kind: input, shape index: {}]   ;;  %s886_s7 = inlined_call_operand.vmem [shape: f32[256,16], index: 7, kind: output, shape index: {}]  }
   0x1   :  { %v31_v0 = vld [vmem:[%s879_s3 + $0x8] sm:$0xff]  ;;  %v30_v2 = vld [vmem:[%s879_s3] sm:$0xff] }
   0x2   :  { %v67_v1 = vld [vmem:[%s880_s4 + $0x8] sm:$0xff]  ;;  %57 = vmatpush.msra.mxu0 %v31_v0  ;;  %v66_v3 = vld [vmem:[%s880_s4] sm:$0xff] }
   0x3   :  { %92 = vmatpush.msra.mxu1 %v67_v1  ;;  %v26_v4 = vld [vmem:[%s881_s1] sm:$0xff]  ;;  %v27_v6 = vld [vmem:[%s881_s1 + $0x8] sm:$0xff] }
   0x4   :  { %v599_v5 = vld [vmem:[%s882_s2] sm:$0xff]  ;;  %58 = vmatpush.msra.mxu0 %v30_v2  ;;  %v610_v7 = vld [vmem:[%s882_s2 + $0x8] sm:$0xff] }
   0x5   :  { %93 = vmatpush.msra.mxu1 %v66_v3  ;;  %470 = vmatmul.msk.f32.vlgmr.msra.gmra.mxu0 %vm36_vm0, %v26_v4  ;;  %v524_v9 = vld [vmem:[%s884_s6] ss:$0 sm:$0xff]  ;;  %s539_s6 = smov 16  }
   0x6   :  { %472 = vmatmul.msk.f32.vlgmr.msra.gmra.mxu1 %vm36_vm0, %v599_v5  ;;  %v523_v15 = vld [vmem:[%s883_s5] ss:$0 sm:$0xff]  ;;  %s538_s5 = smov 32  }
   0xd   :  { %471 = vmatmul.msk.f32.gmra.mxu0 %vm36_vm0, %v27_v6 }
   0xe   :  { %473 = vmatmul.msk.f32.gmra.mxu1 %vm36_vm0, %v610_v7 }
  0x82   :  { %v60_v13 = vpop.f32.mrf.mxu0 }
  0x83   :  { %v95_v8 = vpop.f32.mrf.mxu1  ;;  %v61_v18 = vadd.f32 %v523_v15, %v60_v13  ;;  %v209_v13 = vld [vmem:[%s885_s0 + $0xc0] sm:$0xff] }
  0x84   :  { %v96_v12 = vadd.f32 %v524_v9, %v95_v8 }
  0x86   :  { %v101_v20 = vadd.f32 %v96_v12, %v61_v18 }
  0x88   :  { %v474_v21 = vmul.f32 -1.442695, %v101_v20  ;;  %v202_v20 = vld [vmem:[%s885_s0 + $0x88] sm:$0xff] }
  0x8a   :  { %v63_v14 = vpop.f32.mrf.mxu0 }
  0x8b   :  { %v98_v10 = vpop.f32.mrf.mxu1  ;;  %v64_v16 = vadd.f32 %v523_v15, %v63_v14  ;;  %v186_v14 = vld [vmem:[%s885_s0 + $0x8] sm:$0xff]  ;;  %v193_v15 = vld [vmem:[%s885_s0 + $0x40] sm:$0xff] }
  0x8c   :  { %v99_v11 = vadd.f32 %v524_v9, %v98_v10  ;;  %v208_v9 = vld [vmem:[%s885_s0 + $0xb8] sm:$0xff]  ;;  %v185_v10 = vld [vmem:[%s885_s0] sm:$0xff] }
  0x8e   :  { %145 = vrot.lane.b32.xlu0 %v99_v11, %s537_s17  ;;  %v102_v17 = vadd.f32 %v99_v11, %v64_v16  ;;  %v192_v11 = vld [vmem:[%s885_s0 + $0x38] sm:$0xff] }
  0x90   :  { %v475_v19 = vmul.f32 -1.442695, %v102_v17  ;;  %v210_v17 = vld [vmem:[%s885_s0 + $0xc8] sm:$0xff] }
  0x92   :  { %525 = vpow2.f32 %v475_v19  ;;  %v194_v19 = vld [vmem:[%s885_s0 + $0x48] sm:$0xff] }
  0x93   :  { %527 = vpow2.f32 %v474_v21  ;;  %v211_v21 = vld [vmem:[%s885_s0 + $0xd0] sm:$0xff] }
  0x96   :  { %143 = vrot.lane.b32.xlu0 %v96_v12, %s537_s17  ;;  %v200_v12 = vld [vmem:[%s885_s0 + $0x78] sm:$0xff] }
  0x98   :  { %v526_v22 = vpop.eup %525 }
  0x99   :  { %v110_v23 = vadd.f32 1.0, %v526_v22  ;;  %v528_v24 = vpop.eup %527  ;;  %v188_v22 = vld [vmem:[%s885_s0 + $0x18] sm:$0xff] }
  0x9a   :  { %v109_v25 = vadd.f32 1.0, %v528_v24  ;;  %v203_v24 = vld [vmem:[%s885_s0 + $0x90] sm:$0xff] }
  0x9b   :  { %529 = vrcp.f32 %v110_v23  ;;  %v137_v34 = vand.u32 2147483648, %v110_v23  ;;  %vm131_vm2 = vweird.f32 %v110_v23  ;;  %v135_v35 = vand.u32 2147483647, %v110_v23 }
  0x9c   :  { %531 = vrcp.f32 %v109_v25  ;;  %v122_v43 = vand.u32 2147483648, %v109_v25  ;;  %vm116_vm6 = vweird.f32 %v109_v25  ;;  %v120_v44 = vand.u32 2147483647, %v109_v25 }
  0x9d   :  { %v138_v38 = vor.u32 1.1754944e-38, %v137_v34  ;;  %vm136_vm4 = vcmp.eq.f32.partialorder %v135_v35, 8.507059e+37  ;;  %v191_v34 = vld [vmem:[%s885_s0 + $0x30] sm:$0xff]  ;;  %v198_v35 = vld [vmem:[%s885_s0 + $0x68] sm:$0xff] }
  0x9e   :  { %v123_v46 = vor.u32 1.1754944e-38, %v122_v43  ;;  %vm121_vm8 = vcmp.eq.f32.partialorder %v120_v44, 8.507059e+37 }
  0xa1   :  { %v530_v26 = vpop.eup %529 }
  0xa2   :  { %v127_v27 = vmul.f32 %v530_v26, %v110_v23  ;;  %v532_v29 = vpop.eup %531  ;;  %vm132_vm1 = vweird.f32 %v530_v26  ;;  %v195_v23 = vld [vmem:[%s885_s0 + $0x50] sm:$0xff] }
  0xa3   :  { %v112_v31 = vmul.f32 %v532_v29, %v109_v25  ;;  %vm133_vm3 = vmor %vm131_vm2, %vm132_vm1  ;;  %vm117_vm5 = vweird.f32 %v532_v29  ;;  %v212_v25 = vld [vmem:[%s885_s0 + $0xd8] sm:$0xff] }
  0xa4   :  { %v128_v28 = vsub.f32 1.0, %v127_v27  ;;  %vm118_vm7 = vmor %vm116_vm6, %vm117_vm5  ;;  %v196_v27 = vld [vmem:[%s885_s0 + $0x58] sm:$0xff] }
  0xa5   :  { %v113_v33 = vsub.f32 1.0, %v112_v31  ;;  %v197_v31 = vld [vmem:[%s885_s0 + $0x60] sm:$0xff] }
  0xa6   :  { %v129_v30 = vmul.f32 %v530_v26, %v128_v28  ;;  %v204_v28 = vld [vmem:[%s885_s0 + $0x98] sm:$0xff] }
  0xa7   :  { %v114_v37 = vmul.f32 %v532_v29, %v113_v33  ;;  %v214_v33 = vld [vmem:[%s885_s0 + $0xe8] sm:$0xff] }
  0xa8   :  { %v130_v32 = vadd.f32 %v530_v26, %v129_v30  ;;  %v190_v30 = vld [vmem:[%s885_s0 + $0x28] sm:$0xff] }
  0xa9   :  { %v115_v42 = vadd.f32 %v532_v29, %v114_v37  ;;  %v215_v37 = vld [vmem:[%s885_s0 + $0xf0] sm:$0xff] }
  0xaa   :  { %v134_v36 = vsel %vm133_vm3, %v530_v26, %v130_v32  ;;  %v189_v26 = vld [vmem:[%s885_s0 + $0x20] sm:$0xff] }
  0xab   :  { %v139_v40 = vsel %vm136_vm4, %v138_v38, %v134_v36  ;;  %v119_v45 = vsel %vm118_vm7, %v532_v29, %v115_v42  ;;  %v213_v29 = vld [vmem:[%s885_s0 + $0xe0] sm:$0xff]  ;;  %v206_v36 = vld [vmem:[%s885_s0 + $0xa8] sm:$0xff]  ;;  %v207_v38 = vld [vmem:[%s885_s0 + $0xb0] sm:$0xff] }
  0xac   :  { %v124_v48 = vsel %vm121_vm8, %v123_v46, %v119_v45  ;;  %v164_v59 = vsub.f32 1.0, %v139_v40  ;;  %v205_v32 = vld [vmem:[%s885_s0 + $0xa0] sm:$0xff] }
  0xad   :  { %v163_v61 = vsub.f32 1.0, %v124_v48 }
 0x100   :  { %v146_v39 = vpop.permute.xlu0 %145 }
 0x101   :  { %v150_v41 = vmul.f32 %v146_v39, %v139_v40  ;;  %v216_v39 = vld [vmem:[%s885_s0 + $0xf8] sm:$0xff] }
 0x103   :  { %155 = vrot.lane.b32.xlu1 %v150_v41, %s538_s5 }
 0x108   :  { %v144_v47 = vpop.permute.xlu0 %143 }
 0x109   :  { %v149_v49 = vmul.f32 %v144_v47, %v124_v48 }
 0x10b   :  { %153 = vrot.lane.b32.xlu1 %v149_v49, %s538_s5 }
 0x113   :  { %175 = vrot.lane.b32.xlu1 %v599_v5, %s539_s6 }
 0x175   :  { %v156_v50 = vpop.permute.xlu1 %155 }
 0x176   :  { %v160_v51 = vadd.f32 %v156_v50, %v64_v16  ;;  %v201_v16 = vld [vmem:[%s885_s0 + $0x80] sm:$0xff] }
 0x178   :  { %533 = vtanh.f32 %v160_v51 }
 0x17d   :  { %v154_v52 = vpop.permute.xlu1 %153 }
 0x17e   :  { %v534_v53 = vpop.eup %533  ;;  %v159_v54 = vadd.f32 %v154_v52, %v61_v18  ;;  %v187_v18 = vld [vmem:[%s885_s0 + $0x10] sm:$0xff] }
 0x17f   :  { %169 = vrot.lane.b32.xlu2 %v534_v53, %s540_s18 }
 0x180   :  { %535 = vtanh.f32 %v159_v54 }
 0x185   :  { %v176_v58 = vpop.permute.xlu1 %175 }
 0x186   :  { %v536_v55 = vpop.eup %535  ;;  %v181_v63 = vmul.f32 %v176_v58, %v124_v48 }
 0x187   :  { %177 = vrot.lane.b32.xlu2 %v610_v7, %s539_s6  ;;  %167 = vrot.lane.b32.xlu0 %v536_v55, %s540_s18  ;;  %v199_v7 = vld [vmem:[%s885_s0 + $0x70] sm:$0xff] }
 0x1d9   :  { %v170_v56 = vpop.permute.xlu2 %169 }
 0x1da   :  { %v174_v0 = vmul.f32 %v170_v56, %v164_v59 }
 0x1e1   :  { %v178_v57 = vpop.permute.xlu2 %177 }
 0x1e2   :  { %v182_v60 = vmul.f32 %v178_v57, %v139_v40 }
 0x1e4   :  { %v184_v2 = vadd.f32 %v182_v60, %v174_v0 }
 0x1f9   :  { %v168_v62 = vpop.permute.xlu0 %167 }
 0x1fa   :  { %v173_v1 = vmul.f32 %v168_v62, %v163_v61 }
 0x1fc   :  { %v183_v3 = vadd.f32 %v181_v63, %v173_v1 }
 0x1fe   :  { %v518_v4 = vpack.i.bf16 %v183_v3, %v184_v2 }
 0x200   :  { %519 = vrot.lane.b32.xlu2 %v518_v4, %s540_s18 }
 0x25a   :  { %v520_v5 = vpop.permute.xlu2 %519 }
 0x25b   :  { %v521_v6 = vunpack.i.l.bf16 %v520_v5  ;;  %v522_v8 = vunpack.i.h.bf16 %v520_v5 }
 0x25d   :  { %335 = vmatpush.msrb.mxu0 %v521_v6  ;;  %508 = vmatpush.msrb.mxu1 %v521_v6 }
 0x25e   :  { %509 = vmatpush.msra.mxu2 %v521_v6  ;;  %510 = vmatpush.msra.mxu3 %v521_v6 }
 0x25f   :  { %336 = vmatpush.msrb.mxu0 %v522_v8  ;;  %511 = vmatpush.msrb.mxu1 %v522_v8 }
 0x260   :  { %512 = vmatpush.msra.mxu2 %v522_v8  ;;  %513 = vmatpush.msra.mxu3 %v522_v8 }
 0x261   :  { %490 = vmatmul.msk.f32.vlgmr.msra.gmra.mxu2 %vm36_vm0, %v199_v7  ;;  %499 = vmatmul.msk.f32.vlgmr.msra.gmra.mxu3 %vm36_vm0, %v208_v9 }
 0x262   :  { %476 = vmatmul.msk.f32.vlgmr.msrb.gmra.mxu0 %vm36_vm0, %v185_v10  ;;  %483 = vmatmul.msk.f32.vlgmr.msrb.gmra.mxu1 %vm36_vm0, %v192_v11 }
 0x269   :  { %491 = vmatmul.msk.f32.gmra.mxu2 %vm36_vm0, %v200_v12  ;;  %500 = vmatmul.msk.f32.gmra.mxu3 %vm36_vm0, %v209_v13 }
 0x26a   :  { %477 = vmatmul.msk.f32.gmra.mxu0 %vm36_vm0, %v186_v14  ;;  %484 = vmatmul.msk.f32.gmra.mxu1 %vm36_vm0, %v193_v15 }
 0x271   :  { %492 = vmatmul.msk.f32.gmra.mxu2 %vm36_vm0, %v201_v16  ;;  %501 = vmatmul.msk.f32.gmra.mxu3 %vm36_vm0, %v210_v17 }
 0x272   :  { %478 = vmatmul.msk.f32.gmra.mxu0 %vm36_vm0, %v187_v18  ;;  %485 = vmatmul.msk.f32.gmra.mxu1 %vm36_vm0, %v194_v19 }
 0x279   :  { %493 = vmatmul.msk.f32.gmra.mxu2 %vm36_vm0, %v202_v20  ;;  %502 = vmatmul.msk.f32.gmra.mxu3 %vm36_vm0, %v211_v21 }
 0x27a   :  { %479 = vmatmul.msk.f32.gmra.mxu0 %vm36_vm0, %v188_v22  ;;  %486 = vmatmul.msk.f32.gmra.mxu1 %vm36_vm0, %v195_v23 }
 0x281   :  { %494 = vmatmul.msk.f32.gmra.mxu2 %vm36_vm0, %v203_v24  ;;  %503 = vmatmul.msk.f32.gmra.mxu3 %vm36_vm0, %v212_v25 }
 0x282   :  { %480 = vmatmul.msk.f32.gmra.mxu0 %vm36_vm0, %v189_v26  ;;  %487 = vmatmul.msk.f32.gmra.mxu1 %vm36_vm0, %v196_v27 }
 0x289   :  { %495 = vmatmul.msk.f32.gmra.mxu2 %vm36_vm0, %v204_v28  ;;  %504 = vmatmul.msk.f32.gmra.mxu3 %vm36_vm0, %v213_v29 }
 0x28a   :  { %481 = vmatmul.msk.f32.gmra.mxu0 %vm36_vm0, %v190_v30  ;;  %488 = vmatmul.msk.f32.gmra.mxu1 %vm36_vm0, %v197_v31 }
 0x291   :  { %496 = vmatmul.msk.f32.gmra.mxu2 %vm36_vm0, %v205_v32  ;;  %505 = vmatmul.msk.f32.gmra.mxu3 %vm36_vm0, %v214_v33 }
 0x292   :  { %482 = vmatmul.msk.f32.gmra.mxu0 %vm36_vm0, %v191_v34  ;;  %489 = vmatmul.msk.f32.gmra.mxu1 %vm36_vm0, %v198_v35 }
 0x299   :  { %497 = vmatmul.msk.f32.gmra.mxu2 %vm36_vm0, %v206_v36  ;;  %506 = vmatmul.msk.f32.gmra.mxu3 %vm36_vm0, %v215_v37 }
 0x2a1   :  { %498 = vmatmul.msk.f32.gmra.mxu2 %vm36_vm0, %v207_v38  ;;  %507 = vmatmul.msk.f32.gmra.mxu3 %vm36_vm0, %v216_v39 }
 0x2df   :  { %v338_v40 = vpop.f32.mrf.mxu0  ;;  %v359_v41 = vpop.f32.mrf.mxu1 }
 0x2e0   :  { %434 = vst.msk [vmem:[%s886_s7] sm:$0xff] %vm36_vm0, %v338_v40 }
 0x2e1   :  { %441 = vst.msk [vmem:[%s886_s7 + $0x38] sm:$0xff] %vm36_vm0, %v359_v41 }
 0x2e4   :  { %v380_v42 = vpop.f32.mrf.mxu2  ;;  %v407_v43 = vpop.f32.mrf.mxu3 }
 0x2e5   :  { %448 = vst.msk [vmem:[%s886_s7 + $0x70] sm:$0xff] %vm36_vm0, %v380_v42 }
 0x2e6   :  { %457 = vst.msk [vmem:[%s886_s7 + $0xb8] sm:$0xff] %vm36_vm0, %v407_v43 }
 0x2e7   :  { %v341_v44 = vpop.f32.mrf.mxu0  ;;  %v362_v45 = vpop.f32.mrf.mxu1 }
 0x2e8   :  { %435 = vst.msk [vmem:[%s886_s7 + $0x8] sm:$0xff] %vm36_vm0, %v341_v44 }
 0x2e9   :  { %442 = vst.msk [vmem:[%s886_s7 + $0x40] sm:$0xff] %vm36_vm0, %v362_v45 }
 0x2ec   :  { %v383_v46 = vpop.f32.mrf.mxu2  ;;  %v410_v47 = vpop.f32.mrf.mxu3 }
 0x2ed   :  { %449 = vst.msk [vmem:[%s886_s7 + $0x78] sm:$0xff] %vm36_vm0, %v383_v46 }
 0x2ee   :  { %458 = vst.msk [vmem:[%s886_s7 + $0xc0] sm:$0xff] %vm36_vm0, %v410_v47 }
 0x2ef   :  { %v344_v48 = vpop.f32.mrf.mxu0  ;;  %v365_v49 = vpop.f32.mrf.mxu1 }
 0x2f0   :  { %436 = vst.msk [vmem:[%s886_s7 + $0x10] sm:$0xff] %vm36_vm0, %v344_v48 }
 0x2f1   :  { %443 = vst.msk [vmem:[%s886_s7 + $0x48] sm:$0xff] %vm36_vm0, %v365_v49 }
 0x2f4   :  { %v386_v50 = vpop.f32.mrf.mxu2  ;;  %v413_v51 = vpop.f32.mrf.mxu3 }
 0x2f5   :  { %450 = vst.msk [vmem:[%s886_s7 + $0x80] sm:$0xff] %vm36_vm0, %v386_v50 }
 0x2f6   :  { %459 = vst.msk [vmem:[%s886_s7 + $0xc8] sm:$0xff] %vm36_vm0, %v413_v51 }
 0x2f7   :  { %v347_v52 = vpop.f32.mrf.mxu0  ;;  %v368_v53 = vpop.f32.mrf.mxu1 }
 0x2f8   :  { %437 = vst.msk [vmem:[%s886_s7 + $0x18] sm:$0xff] %vm36_vm0, %v347_v52 }
 0x2f9   :  { %444 = vst.msk [vmem:[%s886_s7 + $0x50] sm:$0xff] %vm36_vm0, %v368_v53 }
 0x2fc   :  { %v389_v54 = vpop.f32.mrf.mxu2  ;;  %v416_v55 = vpop.f32.mrf.mxu3 }
 0x2fd   :  { %451 = vst.msk [vmem:[%s886_s7 + $0x88] sm:$0xff] %vm36_vm0, %v389_v54 }
 0x2fe   :  { %460 = vst.msk [vmem:[%s886_s7 + $0xd0] sm:$0xff] %vm36_vm0, %v416_v55 }
 0x2ff   :  { %v350_v56 = vpop.f32.mrf.mxu0  ;;  %v371_v57 = vpop.f32.mrf.mxu1 }
 0x300   :  { %438 = vst.msk [vmem:[%s886_s7 + $0x20] sm:$0xff] %vm36_vm0, %v350_v56 }
 0x301   :  { %445 = vst.msk [vmem:[%s886_s7 + $0x58] sm:$0xff] %vm36_vm0, %v371_v57 }
 0x304   :  { %v392_v58 = vpop.f32.mrf.mxu2  ;;  %v419_v59 = vpop.f32.mrf.mxu3 }
 0x305   :  { %452 = vst.msk [vmem:[%s886_s7 + $0x90] sm:$0xff] %vm36_vm0, %v392_v58 }
 0x306   :  { %461 = vst.msk [vmem:[%s886_s7 + $0xd8] sm:$0xff] %vm36_vm0, %v419_v59 }
 0x307   :  { %v353_v60 = vpop.f32.mrf.mxu0  ;;  %v374_v61 = vpop.f32.mrf.mxu1 }
 0x308   :  { %439 = vst.msk [vmem:[%s886_s7 + $0x28] sm:$0xff] %vm36_vm0, %v353_v60 }
 0x309   :  { %446 = vst.msk [vmem:[%s886_s7 + $0x60] sm:$0xff] %vm36_vm0, %v374_v61 }
 0x30c   :  { %v395_v62 = vpop.f32.mrf.mxu2  ;;  %v422_v63 = vpop.f32.mrf.mxu3 }
 0x30d   :  { %453 = vst.msk [vmem:[%s886_s7 + $0x98] sm:$0xff] %vm36_vm0, %v395_v62 }
 0x30e   :  { %462 = vst.msk [vmem:[%s886_s7 + $0xe0] sm:$0xff] %vm36_vm0, %v422_v63 }
 0x30f   :  { %v356_v0 = vpop.f32.mrf.mxu0  ;;  %v377_v1 = vpop.f32.mrf.mxu1 }
 0x310   :  { %440 = vst.msk [vmem:[%s886_s7 + $0x30] sm:$0xff] %vm36_vm0, %v356_v0 }
 0x311   :  { %447 = vst.msk [vmem:[%s886_s7 + $0x68] sm:$0xff] %vm36_vm0, %v377_v1 }
 0x314   :  { %v398_v2 = vpop.f32.mrf.mxu2  ;;  %v425_v3 = vpop.f32.mrf.mxu3 }
 0x315   :  { %454 = vst.msk [vmem:[%s886_s7 + $0xa0] sm:$0xff] %vm36_vm0, %v398_v2 }
 0x316   :  { %463 = vst.msk [vmem:[%s886_s7 + $0xe8] sm:$0xff] %vm36_vm0, %v425_v3 }
 0x31c   :  { %v401_v4 = vpop.f32.mrf.mxu2  ;;  %v428_v5 = vpop.f32.mrf.mxu3 }
 0x31d   :  { %455 = vst.msk [vmem:[%s886_s7 + $0xa8] sm:$0xff] %vm36_vm0, %v401_v4 }
 0x31e   :  { %464 = vst.msk [vmem:[%s886_s7 + $0xf0] sm:$0xff] %vm36_vm0, %v428_v5 }
 0x324   :  { %v404_v6 = vpop.f32.mrf.mxu2  ;;  %v431_v8 = vpop.f32.mrf.mxu3 }
 0x325   :  { %456 = vst.msk [vmem:[%s886_s7 + $0xb0] sm:$0xff] %vm36_vm0, %v404_v6 }
 0x326   :  { %465 = vst.msk [vmem:[%s886_s7 + $0xf8] sm:$0xff] %vm36_vm0, %v431_v8 }

</bundles_post_ra>
